<compile_context>
chip_gen: v7x
topology: tpu7x:2x2x1
jax: 0.10.0
libtpu: 0.0.40
codegen_flags: <defaults>
</compile_context>

<pallas_src>
import functools
import math

import jax
import jax.numpy as jnp
from jax.experimental import pallas as pl
from jax.experimental.pallas import tpu as pltpu


# --------------------------------------------------------------------- helpers
def _default_compute_dtype():
    """bf16 MXU operands pay off on v6e/v7x (2x256x256 bf16 MXU, bf16 VPU);
    on v5e (no bf16 VPU) or unknown hardware keep exact f32 operands."""
    try:
        kind = jax.devices()[0].device_kind.lower()
    except Exception:  # pragma: no cover - be conservative
        return jnp.float32
    if any(tag in kind for tag in ("v6", "v7", "7x")):
        return jnp.bfloat16
    return jnp.float32


def _choose_q_tile(T: int) -> int:
    """Query-block size.  The full key/value axis is always resident; only the
    query axis is split, and only when T is large enough that >=2 independent
    blocks are useful (v7x megacore).  Blocks are 8-aligned divisors of T.

    VMEM note (v7x, 64 MiB physical / 32 MiB scoped): the largest intermediate
    is the f32 (B, tq, T) scores tile; at this module's shapes it is << 1 MiB,
    so no further tiling is needed.  Revisit only if T grows into the many
    thousands.
    """
    for t in (512, 256, 128):
        if T % t == 0 and T // t >= 2:
            return t
    return T


# ---------------------------------------------------------------- fused kernel
def _attention_head_kernel(xq_ref, xkv_ref, wq_ref, bq_ref, wkv_ref, bkv_ref,
                           o_ref, *, head_dim, compute_dtype):
    cd = compute_dtype
    f32 = jnp.float32

    b_dim, tq, e_dim = xq_ref.shape
    t_full = xkv_ref.shape[1]

    # ---- Q projection for this query block (1/sqrt(d_k) already folded into
    # wq/bq at parameter-prep time). One canonical 2-D MXU matmul. ----
    xq2 = xq_ref[...].reshape(b_dim * tq, e_dim)
    q = jnp.dot(xq2.astype(cd), wq_ref[...].astype(cd),
                preferred_element_type=f32).reshape(b_dim, tq, head_dim)
    q = q + bq_ref[...].astype(f32)                      # (1,H) broadcasts

    # ---- K/V projection for the FULL sequence, fused into one (E, 2H) matmul
    # (recomputed per query block; trivial FLOPs at H=16, keeps blocks fully
    # independent so the grid can be "parallel"). ----
    xkv2 = xkv_ref[...].reshape(b_dim * t_full, e_dim)
    kv = jnp.dot(xkv2.astype(cd), wkv_ref[...].astype(cd),
                 preferred_element_type=f32).reshape(b_dim, t_full, 2 * head_dim)
    kv = kv + bkv_ref[...].astype(f32)
    k = kv[..., :head_dim]
    v = kv[..., head_dim:]

    # ---- scores (B, tq, T): full key axis resident, so the K relayout for the
    # H-contraction happens once per grid step, not per key tile. ----
    s = jnp.einsum("bqh,bkh->bqk", q.astype(cd), k.astype(cd),
                   preferred_element_type=f32)

    # ---- F.softmax(att_scores) with no dim: PyTorch's legacy implicit dim for
    # a 3-D tensor is dim=0 (batch).  The full batch is resident in every block
    # (B is never tiled), so this normalization is block-local.  Exact divide
    # (no approx reciprocal) per the correctness review. ----
    m = jnp.max(s, axis=0, keepdims=True)
    e = jnp.exp(s - m)
    w = e / jnp.sum(e, axis=0, keepdims=True)

    # ---- att_weights @ V ----
    o_ref[...] = jnp.einsum("bqk,bkh->bqh", w.astype(cd), v.astype(cd),
                            preferred_element_type=f32).astype(o_ref.dtype)


# --------------------------------------------------------------- public wrapper
def fuse_attention_params(wq, bq, wk, bk, wv, bv):
    """One-time parameter prep (hoisted out of the forward path).

    * weights are stored as (E, H) (already transposed from nn.Linear's (H, E)),
    * 1/sqrt(head_dim) is folded into the q weight/bias (scales E*H numbers
      once instead of the (B, T, T) scores every call),
    * k and v are packed into a single (E, 2H) weight for one fused MXU pass.
    """
    head_dim = wq.shape[1]
    scale = jnp.asarray(1.0 / math.sqrt(head_dim), wq.dtype)
    return (wq * scale, bq * scale,
            jnp.concatenate([wk, wv], axis=1),
            jnp.concatenate([bk, bv], axis=1))


def attention_head(hidden_state, fused_params, *, compute_dtype=None):
    """hidden_state: (B, T, E); fused_params from `fuse_attention_params`."""
    wq, bq, w_kv, b_kv = fused_params
    B, T, E = hidden_state.shape
    H = wq.shape[1]
    if compute_dtype is None:
        compute_dtype = _default_compute_dtype()

    tq = _choose_q_tile(T)
    kernel = functools.partial(_attention_head_kernel, head_dim=H,
                               compute_dtype=compute_dtype)

    return pl.pallas_call(
        kernel,
        out_shape=jax.ShapeDtypeStruct((B, T, H), hidden_state.dtype),
        grid=(T // tq,),
        in_specs=[
            # x for the Q projection: blocked over the query axis.
            pl.BlockSpec((B, tq, E), lambda qi: (0, qi, 0)),
            # x for the K/V projection: full sequence, index-invariant (fetched
            # once, reused across query blocks).
            pl.BlockSpec((B, T, E), lambda qi: (0, 0, 0)),
            pl.BlockSpec((E, H), lambda qi: (0, 0)),
            pl.BlockSpec((1, H), lambda qi: (0, 0)),
            pl.BlockSpec((E, 2 * H), lambda qi: (0, 0)),
            pl.BlockSpec((1, 2 * H), lambda qi: (0, 0)),
        ],
        out_specs=pl.BlockSpec((B, tq, H), lambda qi: (0, qi, 0)),
        compiler_params=pltpu.CompilerParams(
            # Query blocks are fully independent -> shard across TensorCores on
            # v7x megacore; no reduction axis remains.
            dimension_semantics=("parallel",),
            # Ample for this module on every generation (v7x scoped default is
            # 32 MiB of 64 MiB physical); per-step footprint here is << 2 MiB.
            vmem_limit_bytes=32 * 1024 * 1024,
        ),
    )(hidden_state, hidden_state, wq, bq, w_kv, b_kv)


# ------------------------------------------------------------ init + reference
def init_params(key, embed_dim, head_dim, dtype=jnp.float32):
    """nn.Linear default init U(-1/sqrt(fan_in), 1/sqrt(fan_in)); weights (E, H)."""
    ks = jax.random.split(key, 6)
    bound = 1.0 / math.sqrt(embed_dim)

    def u(k, shape):
        return jax.random.uniform(k, shape, dtype=dtype, minval=-bound, maxval=bound)

    return (u(ks[0], (embed_dim, head_dim)), u(ks[1], (1, head_dim)),
            u(ks[2], (embed_dim, head_dim)), u(ks[3], (1, head_dim)),
            u(ks[4], (embed_dim, head_dim)), u(ks[5], (1, head_dim)))


def attention_head_ref(x, wq, bq, wk, bk, wv, bv):
    """Pure-JAX reference mirroring the PyTorch forward (softmax over dim 0)."""
    q = x @ wq + bq
    k = x @ wk + bk
    v = x @ wv + bv
    scores = jnp.einsum("bqh,bkh->bqk", q, k) / math.sqrt(q.shape[-1])
    w = jax.nn.softmax(scores, axis=0)
    return jnp.einsum("bqk,bkh->bqh", w, v)


# ----------------------------------------------------------------------- main
if __name__ == "__main__":
    key = jax.random.PRNGKey(0)
    kx, kp, kx2, kp2 = jax.random.split(key, 4)

    # Small shapes consistent with the module: B=2, T=8, E=32, H=16.
    B, T, E, H = 2, 8, 32, 16
    x = jax.random.normal(kx, (B, T, E), dtype=jnp.float32)
    raw = init_params(kp, E, H)
    fused = fuse_attention_params(*raw)          # one-time, outside the hot path

    out = jax.block_until_ready(attention_head(x, fused, compute_dtype=jnp.float32))
    ref = attention_head_ref(x, *raw)
    assert out.shape == (B, T, H)
    assert jnp.allclose(out, ref, atol=5e-3, rtol=5e-3), "mismatch (small, f32)"

    # Larger shape exercising the query-blocked parallel grid.
    B2, T2, E2, H2 = 2, 256, 128, 16
    x2 = jax.random.normal(kx2, (B2, T2, E2), dtype=jnp.float32)
    raw2 = init_params(kp2, E2, H2)
    fused2 = fuse_attention_params(*raw2)

    out2 = jax.block_until_ready(attention_head(x2, fused2, compute_dtype=jnp.float32))
    ref2 = attention_head_ref(x2, *raw2)
    assert out2.shape == (B2, T2, H2)
    assert jnp.allclose(out2, ref2, atol=5e-3, rtol=5e-3), "mismatch (tiled, f32)"

    # Generation-gated fast path (bf16 MXU operands on v6e/v7x, f32 accumulation;
    # exact f32 on v5e).  Checked with a scale-relative RMSE since bf16 operands
    # are intentionally reduced precision.
    out3 = jax.block_until_ready(attention_head(x2, fused2))
    rmse = jnp.sqrt(jnp.mean((out3 - ref2) ** 2))
    scale = jnp.sqrt(jnp.mean(ref2 ** 2))
    assert rmse <= 2e-2 * scale, "mismatch (auto compute dtype)"

    print("KERNEL_OK")
</pallas_src>

<mosaic_0001>
module attributes {stable_mosaic.version = 11 : i64} {
  func.func @_attention_head_kernel(%arg0: i32, %arg1: memref<2x8x32xf32, #tpu.memory_space<vmem>>, %arg2: memref<2x8x32xf32, #tpu.memory_space<vmem>>, %arg3: memref<32x16xf32, #tpu.memory_space<vmem>>, %arg4: memref<1x16xf32, #tpu.memory_space<vmem>>, %arg5: memref<32x32xf32, #tpu.memory_space<vmem>>, %arg6: memref<1x32xf32, #tpu.memory_space<vmem>>, %arg7: memref<2x8x16xf32, #tpu.memory_space<vmem>>) attributes {dimension_semantics = [#tpu.dimension_semantics<parallel>], iteration_bounds = array<i64: 1>, scalar_prefetch = 0 : i64, scratch_operands = 0 : i64, tpu.core_type = #tpu.core_type<tc>, window_params = [{transform_indices = @transform_0, window_bounds = array<i64: 2, 8, 32>}, {pipeline_mode = #tpu.pipeline_mode<synchronous>, transform_indices = @transform_1, window_bounds = array<i64: 2, 8, 32>}, {pipeline_mode = #tpu.pipeline_mode<synchronous>, transform_indices = @transform_2, window_bounds = array<i64: 32, 16>}, {pipeline_mode = #tpu.pipeline_mode<synchronous>, transform_indices = @transform_3, window_bounds = array<i64: 1, 16>}, {pipeline_mode = #tpu.pipeline_mode<synchronous>, transform_indices = @transform_4, window_bounds = array<i64: 32, 32>}, {pipeline_mode = #tpu.pipeline_mode<synchronous>, transform_indices = @transform_5, window_bounds = array<i64: 1, 32>}, {transform_indices = @transform_6, window_bounds = array<i64: 2, 8, 16>}]} {
    %c0 = arith.constant 0 : index
    %c0_0 = arith.constant 0 : index
    %c0_1 = arith.constant 0 : index
    %0 = vector.load %arg1[%c0, %c0_0, %c0_1] : memref<2x8x32xf32, #tpu.memory_space<vmem>>, vector<2x8x32xf32>
    %1 = vector.shape_cast %0 : vector<2x8x32xf32> to vector<16x32xf32>
    %c0_2 = arith.constant 0 : index
    %c0_3 = arith.constant 0 : index
    %2 = vector.load %arg3[%c0_2, %c0_3] : memref<32x16xf32, #tpu.memory_space<vmem>>, vector<32x16xf32>
    %cst = arith.constant dense<0.000000e+00> : vector<16x16xf32>
    %3 = tpu.matmul %1, %2, %cst {dimension_numbers = #tpu.dot_dimension_numbers<[1], [0], [0], [1], [0, 0, 1, 1], [], []>} : vector<16x32xf32>, vector<32x16xf32>, vector<16x16xf32> -> vector<16x16xf32>
    %4 = vector.shape_cast %3 : vector<16x16xf32> to vector<2x8x16xf32>
    %c0_4 = arith.constant 0 : index
    %c0_5 = arith.constant 0 : index
    %5 = vector.load %arg4[%c0_4, %c0_5] : memref<1x16xf32, #tpu.memory_space<vmem>>, vector<1x16xf32>
    %6 = vector.shape_cast %5 : vector<1x16xf32> to vector<1x1x16xf32>
    %7 = vector.broadcast %6 : vector<1x1x16xf32> to vector<2x8x16xf32>
    %8 = arith.addf %4, %7 : vector<2x8x16xf32>
    %c0_6 = arith.constant 0 : index
    %c0_7 = arith.constant 0 : index
    %c0_8 = arith.constant 0 : index
    %9 = vector.load %arg2[%c0_6, %c0_7, %c0_8] : memref<2x8x32xf32, #tpu.memory_space<vmem>>, vector<2x8x32xf32>
    %10 = vector.shape_cast %9 : vector<2x8x32xf32> to vector<16x32xf32>
    %c0_9 = arith.constant 0 : index
    %c0_10 = arith.constant 0 : index
    %11 = vector.load %arg5[%c0_9, %c0_10] : memref<32x32xf32, #tpu.memory_space<vmem>>, vector<32x32xf32>
    %cst_11 = arith.constant dense<0.000000e+00> : vector<16x32xf32>
    %12 = tpu.matmul %10, %11, %cst_11 {dimension_numbers = #tpu.dot_dimension_numbers<[1], [0], [0], [1], [0, 0, 1, 1], [], []>} : vector<16x32xf32>, vector<32x32xf32>, vector<16x32xf32> -> vector<16x32xf32>
    %13 = vector.shape_cast %12 : vector<16x32xf32> to vector<2x8x32xf32>
    %c0_12 = arith.constant 0 : index
    %c0_13 = arith.constant 0 : index
    %14 = vector.load %arg6[%c0_12, %c0_13] : memref<1x32xf32, #tpu.memory_space<vmem>>, vector<1x32xf32>
    %15 = vector.shape_cast %14 : vector<1x32xf32> to vector<1x1x32xf32>
    %16 = vector.broadcast %15 : vector<1x1x32xf32> to vector<2x8x32xf32>
    %17 = arith.addf %13, %16 : vector<2x8x32xf32>
    %18 = vector.extract_strided_slice %17 {offsets = [0, 0, 0], sizes = [2, 8, 16], strides = [1, 1, 1]} : vector<2x8x32xf32> to vector<2x8x16xf32>
    %19 = vector.extract_strided_slice %17 {offsets = [0, 0, 16], sizes = [2, 8, 16], strides = [1, 1, 1]} : vector<2x8x32xf32> to vector<2x8x16xf32>
    "tpu.trace_start"() <{level = 10 : i32, message = "bqh,bkh->bqk"}> : () -> ()
    %cst_14 = arith.constant dense<0.000000e+00> : vector<2x8x8xf32>
    %20 = tpu.matmul %8, %18, %cst_14 {dimension_numbers = #tpu.dot_dimension_numbers<[2], [2], [1], [1], [0, 0, 0, 1, 1, 1], [0], [0]>} : vector<2x8x16xf32>, vector<2x8x16xf32>, vector<2x8x8xf32> -> vector<2x8x8xf32>
    "tpu.trace_stop"() : () -> ()
    %cst_15 = arith.constant dense<0xFF800000> : vector<8x8xf32>
    %21 = vector.multi_reduction <maximumf>, %20, %cst_15 [0] : vector<2x8x8xf32> to vector<8x8xf32>
    %22 = vector.shape_cast %21 : vector<8x8xf32> to vector<1x8x8xf32>
    %23 = vector.broadcast %22 : vector<1x8x8xf32> to vector<2x8x8xf32>
    %24 = arith.subf %20, %23 : vector<2x8x8xf32>
    %25 = math.exp %24 : vector<2x8x8xf32>
    %cst_16 = arith.constant dense<0.000000e+00> : vector<8x8xf32>
    %26 = vector.multi_reduction <add>, %25, %cst_16 [0] : vector<2x8x8xf32> to vector<8x8xf32>
    %27 = vector.shape_cast %26 : vector<8x8xf32> to vector<1x8x8xf32>
    %28 = vector.broadcast %27 : vector<1x8x8xf32> to vector<2x8x8xf32>
    %29 = arith.divf %25, %28 : vector<2x8x8xf32>
    "tpu.trace_start"() <{level = 10 : i32, message = "bqk,bkh->bqh"}> : () -> ()
    %cst_17 = arith.constant dense<0.000000e+00> : vector<2x8x16xf32>
    %30 = tpu.matmul %29, %19, %cst_17 {dimension_numbers = #tpu.dot_dimension_numbers<[2], [1], [1], [2], [0, 0, 0, 1, 1, 2], [0], [0]>} : vector<2x8x8xf32>, vector<2x8x16xf32>, vector<2x8x16xf32> -> vector<2x8x16xf32>
    "tpu.trace_stop"() : () -> ()
    %c0_18 = arith.constant 0 : index
    %c0_19 = arith.constant 0 : index
    %c0_20 = arith.constant 0 : index
    %31 = vector.load %arg7[%c0_18, %c0_19, %c0_20] : memref<2x8x16xf32, #tpu.memory_space<vmem>>, vector<2x8x16xf32>
    tpu.vector_store %arg7[%c0_18, %c0_19, %c0_20], %30 {strides = array<i32>} : memref<2x8x16xf32, #tpu.memory_space<vmem>>, vector<2x8x16xf32>,
    return
  }
  func.func @transform_0(%arg0: i32) -> (i32, i32, i32) {
    %c0_i32 = arith.constant 0 : i32
    %c0_i32_0 = arith.constant 0 : i32
    %c0_i32_1 = arith.constant 0 : i32
    return %c0_i32, %arg0, %c0_i32_0 : i32, i32, i32
  }
  func.func @transform_1(%arg0: i32) -> (i32, i32, i32) {
    %c0_i32 = arith.constant 0 : i32
    %c0_i32_0 = arith.constant 0 : i32
    %c0_i32_1 = arith.constant 0 : i32
    %c0_i32_2 = arith.constant 0 : i32
    return %c0_i32, %c0_i32_0, %c0_i32_1 : i32, i32, i32
  }
  func.func @transform_2(%arg0: i32) -> (i32, i32) {
    %c0_i32 = arith.constant 0 : i32
    %c0_i32_0 = arith.constant 0 : i32
    %c0_i32_1 = arith.constant 0 : i32
    return %c0_i32, %c0_i32_0 : i32, i32
  }
  func.func @transform_3(%arg0: i32) -> (i32, i32) {
    %c0_i32 = arith.constant 0 : i32
    %c0_i32_0 = arith.constant 0 : i32
    %c0_i32_1 = arith.constant 0 : i32
    return %c0_i32, %c0_i32_0 : i32, i32
  }
  func.func @transform_4(%arg0: i32) -> (i32, i32) {
    %c0_i32 = arith.constant 0 : i32
    %c0_i32_0 = arith.constant 0 : i32
    %c0_i32_1 = arith.constant 0 : i32
    return %c0_i32, %c0_i32_0 : i32, i32
  }
  func.func @transform_5(%arg0: i32) -> (i32, i32) {
    %c0_i32 = arith.constant 0 : i32
    %c0_i32_0 = arith.constant 0 : i32
    %c0_i32_1 = arith.constant 0 : i32
    return %c0_i32, %c0_i32_0 : i32, i32
  }
  func.func @transform_6(%arg0: i32) -> (i32, i32, i32) {
    %c0_i32 = arith.constant 0 : i32
    %c0_i32_0 = arith.constant 0 : i32
    %c0_i32_1 = arith.constant 0 : i32
    return %c0_i32, %arg0, %c0_i32_0 : i32, i32, i32
  }
}

</mosaic_0001>

<bundles_post_ra>
// kernel: tpu_custom_call.1
= control target key start
LH: loop header
LB: loop body
LE: loop exit
PB: predicated region body
PF: predicated region fallthrough
CT: control target
= control target key end

     0   :  { %11 = vsyncpa [#allocation3], 0  ;;  %s850_s0 = inlined_call_operand.vmem [shape: f32[2,8,32], index: 0, kind: input, shape index: {}]   ;;  %s851_s1 = inlined_call_operand.hbm [shape: f32[2,8,32], index: 1, kind: input, shape index: {}]   ;;  %s852_s2 = inlined_call_operand.vmem [shape: f32[32,16], index: 2, kind: input, shape index: {}]   ;;  %s853_s3 = inlined_call_operand.vmem [shape: f32[1,16], index: 3, kind: input, shape index: {}]   ;;  %s854_s4 = inlined_call_operand.vmem [shape: f32[32,32], index: 4, kind: input, shape index: {}]   ;;  %s855_s5 = inlined_call_operand.vmem [shape: f32[1,32], index: 5, kind: input, shape index: {}]   ;;  %s856_s6 = inlined_call_operand.hbm [shape: f32[2,8,16], index: 6, kind: output, shape index: {}]  }
   0x1   :  { %12 = vsyncpa [#allocation4], 0  ;;  %s722_s21 = smov [#allocation2]   ;;  %s674_s25 = scalar_lea.hbm %s851_s1, 256 }
   0x2   :  { %s20_s22 = sshll.u32 %s722_s21, 4  ;;  %p675_p0 = scmp.ne.s32.totalorder %s851_s1, %s674_s25  ;;  %s21_s22 = int_to_ptr.vmem [resolvable:$true] %s20_s22 }
   0x3   :  { %p678_p1 = scmp.lt.u32.totalorder %s674_s25, %s851_s1 }
   0x5   :  { %p680_p2 = pnand %p678_p1, %p675_p0 }
   0x7   :  { %683 = shalt.err (!%p680_p2)
}
   0x8   :  { %s684_s30 = scalar_lea.vmem %s21_s22, 256  ;;  %p689_p4 = scmp.lt.s32.totalorder %s21_s22, %s21_s22 }
   0x9   :  { %p685_p3 = scmp.ne.s32.totalorder %s21_s22, %s684_s30  ;;  %p690_p5 = scmp.lt.s32.totalorder %s684_s30, %s684_s30 }
   0xb   :  { %p691_p6 = por %p690_p5, %p689_p4 }
   0xd   :  { %p692_p7 = pnand %p691_p6, %p685_p3 }
   0xf   :  { %695 = shalt.err (!%p692_p7)
}
  0x10   :  { %s723_s7 = smov 128   ;;  %s724_s8 = smov 8  }
  0x11   :  { %26 = dma.hbm_to_vmem [thread:$0]  %s851_s1, 256, %s21_s22, [#allocation3], %s723_s7, %s723_s7, %s724_s8  }
  0x12   :  { %718 = dma.done.wait [#allocation3], 256  }
  0x13   :  { %719 = vsyncadd [#allocation3], 4294967040  ;;  %v137_v0 = vld [vmem:[%s854_s4] sm:$0xff]  ;;  %v138_v1 = vld [vmem:[%s854_s4 + $0x8] sm:$0xff]  ;;  %vm44_vm0 = vcmask 261120   ;;  %v725_v16 = vmov 0.0  }
  0x14   :  { %v40_v2 = vld [vmem:[%s852_s2] sm:$0xff]  ;;  %v653_v3 = vpack.c.bf16 %v138_v1, %v137_v0  ;;  %v41_v4 = vld [vmem:[%s852_s2 + $0x8] sm:$0xff]  ;;  %v139_v5 = vld [vmem:[%s854_s4 + $0x10] sm:$0xff]  ;;  %vm726_vm1 = vmmov 0   ;;  %vm231_vm2 = vcmask 130048   ;;  %vm384_vm3 = vcmask 64512  }
  0x15   :  { %v140_v6 = vld [vmem:[%s854_s4 + $0x18] sm:$0xff]  ;;  %v645_v7 = vpack.c.bf16 %v41_v4, %v40_v2  ;;  %v42_v9 = vld [vmem:[%s852_s2 + $0x10] sm:$0xff]  ;;  %v135_v11 = vld [vmem:[#allocation2] sm:$0xff] }
  0x16   :  { %v657_v8 = vpack.c.bf16 %v140_v6, %v139_v5  ;;  %v43_v10 = vld [vmem:[%s852_s2 + $0x18] sm:$0xff]  ;;  %654 = vmatprep.subr.bf16.mxu1 %v653_v3  ;;  %622 = vmatprep.mubr.msk.f32.mxu1 %vm44_vm0, %v135_v11  ;;  %v38_v13 = vld [vmem:[%s850_s0] sm:$0xff]  ;;  %v136_v14 = vld [vmem:[#allocation2 + $0x8] sm:$0xff] }
  0x17   :  { %v649_v12 = vpack.c.bf16 %v43_v10, %v42_v9  ;;  %656 = vmatpush3.bf16.msra.mxu1 %v653_v3  ;;  %646 = vmatprep.subr.bf16.mxu0 %v645_v7  ;;  %v39_v15 = vld [vmem:[%s850_s0 + $0x8] sm:$0xff]  ;;  %v576_v17 = vld [vmem:[%s855_s5] ss:$0 sm:$0xff]  ;;  %s727_s0 = smov 112  }
  0x18   :  { %648 = vmatpush3.bf16.msra.mxu0 %v645_v7  ;;  %658 = vmatprep.subr.bf16.mxu1 %v657_v8  ;;  %v573_v18 = vld [vmem:[%s853_s3] ss:$0 sm:$0xff]  ;;  %s728_s3 = smov [#allocation5]  }
  0x19   :  { %650 = vmatprep.subr.bf16.mxu0 %v649_v12  ;;  %611 = vmatprep.mubr.msk.f32.mxu0 %vm44_vm0, %v38_v13  ;;  %s559_s5 = sshll.u32 %s728_s3, 4  ;;  %s560_s5 = int_to_ptr.vmem [resolvable:$true] %s559_s5 }
  0x1a   :  { %s696_s10 = scalar_lea.vmem %s560_s5, 256  ;;  %p701_p9 = scmp.lt.s32.totalorder %s560_s5, %s560_s5 }
  0x1b   :  { %660 = vmatpush3.bf16.msra.mxu1 %v657_v8  ;;  %p697_p8 = scmp.ne.s32.totalorder %s560_s5, %s696_s10  ;;  %p702_p10 = scmp.lt.s32.totalorder %s696_s10, %s696_s10 }
  0x1c   :  { %652 = vmatpush3.bf16.msra.mxu0 %v649_v12  ;;  %630 = vmatprep.subr.mxu1 %v725_v16 }
  0x1d   :  { %625 = vmatprep.subr.mxu0 %v725_v16  ;;  %p703_p11 = por %p702_p10, %p701_p9 }
  0x1e   :  { %623 = vmatmul.mubr.msk.f32.vlgmr.msra.gmra.mrb[0].mxu1 %vm44_vm0, %v136_v14 }
  0x1f   :  { %612 = vmatmul.mubr.msk.f32.vlgmr.msra.gmra.mrb[0].mxu0 %vm44_vm0, %v39_v15  ;;  %632 = vmatprep.mubr.msk.f32.mxu1 %vm726_vm1, %v725_v16  ;;  %p704_p12 = pnand %p703_p11, %p697_p8 }
  0x20   :  { %627 = vmatprep.mubr.msk.f32.mxu0 %vm726_vm1, %v725_v16 }
  0xf1   :  { %v624_v19 = vpop.f32.mrb[0].mxu1 }
  0xf2   :  { %v230_v20 = vadd.f32 %v624_v19, %v576_v17  ;;  %v213_v21 = vpop.f32.mrb[1].mxu1  ;;  %v613_v22 = vpop.f32.mrb[0].mxu0 }
  0xf3   :  { %v229_v23 = vadd.f32 %v576_v17, %v213_v21  ;;  %v134_v24 = vadd.f32 %v613_v22, %v573_v18  ;;  %v117_v25 = vpop.f32.mrb[1].mxu0 }
  0xf4   :  { %631 = vmatpush3.xpose.msk.msra.mxu1 %vm231_vm2, %v230_v20  ;;  %v133_v26 = vadd.f32 %v573_v18, %v117_v25 }
  0xf5   :  { %400 = vrot.lane.b32.xlu0 %v229_v23, %s727_s0  ;;  %626 = vmatpush3.xpose.msk.msra.mxu0 %vm231_vm2, %v229_v23 }
  0xf6   :  { %635 = vmatprep.subr.mxu0 %v725_v16  ;;  %640 = vmatprep.subr.mxu1 %v725_v16 }
  0xf7   :  { %633 = vmatmul.mubr.msk.f32.vlgmr.msra.gmra.mrb[2].mxu1 %vm231_vm2, %v134_v24 }
  0xf8   :  { %628 = vmatmul.mubr.msk.f32.vlgmr.msra.gmra.mrb[2].mxu0 %vm231_vm2, %v133_v26  ;;  %642 = vmatprep.mubr.msk.f32.mxu1 %vm726_vm1, %v725_v16 }
  0xf9   :  { %476 = vrot.lane.b32.xlu0 %v230_v20, %s727_s0  ;;  %637 = vmatprep.mubr.msk.f32.mxu0 %vm726_vm1, %v725_v16 }
 0x167   :  { %v401_v27 = vpop.permute.xlu0 %400 }
 0x168   :  { %636 = vmatpush3.msra.mxu0 %v401_v27 }
 0x16b   :  { %v477_v28 = vpop.permute.xlu0 %476 }
 0x16c   :  { %641 = vmatpush3.msra.mxu1 %v477_v28 }
 0x1ca   :  { %v380_v29 = vpop.f32.mrb[2].mxu1 }
 0x1cb   :  { %v386_v30 = vsel %vm384_vm3, %v380_v29, -inf  ;;  %v304_v31 = vpop.f32.mrb[2].mxu0  ;;  %v634_v32 = vpop.f32.mrb[3].mxu1 }
 0x1cc   :  { %v385_v33 = vsel %vm384_vm3, %v304_v31, -inf  ;;  %v629_v34 = vpop.f32.mrb[3].mxu0 }
 0x1cd   :  { %v387_v35 = vmax.f32 %v385_v33, %v386_v30 }
 0x1cf   :  { %v388_v36 = vsub.f32 %v304_v31, %v387_v35  ;;  %v389_v37 = vsub.f32 %v380_v29, %v387_v35 }
 0x1d1   :  { %v390_v38 = vmul.f32 1.442695, %v388_v36  ;;  %v392_v39 = vmul.f32 1.442695, %v389_v37 }
 0x1d3   :  { %668 = vpow2.f32 %v390_v38 }
 0x1d4   :  { %670 = vpow2.f32 %v392_v39 }
 0x1dd   :  { %v669_v40 = vpop.eup %668 }
 0x1de   :  { %v671_v41 = vpop.eup %670  ;;  %v394_v42 = vsel %vm384_vm3, %v669_v40, 0.0 }
 0x1df   :  { %v395_v43 = vsel %vm384_vm3, %v671_v41, 0.0 }
 0x1e0   :  { %v396_v44 = vadd.f32 %v395_v43, %v394_v42 }
 0x1e2   :  { %672 = vrcp.f32 %v396_v44 }
 0x1ec   :  { %v673_v45 = vpop.eup %672 }
 0x1ed   :  { %v398_v46 = vmul.f32 %v673_v45, %v669_v40  ;;  %v399_v47 = vmul.f32 %v673_v45, %v671_v41 }
 0x1ef   :  { %638 = vmatmul.mubr.msk.f32.vlgmr.msra.gmra.mrb[4].mxu0 %vm384_vm3, %v398_v46  ;;  %643 = vmatmul.mubr.msk.f32.vlgmr.msra.gmra.mrb[4].mxu1 %vm384_vm3, %v399_v47 }
 0x2c2   :  { %v472_v48 = vpop.f32.mrb[4].mxu0  ;;  %v548_v49 = vpop.f32.mrb[4].mxu1 }
 0x2c3   :  { %552 = vst.msk [vmem:[#allocation5] sm:$0xff] %vm231_vm2, %v472_v48  ;;  %553 = vst.msk [vmem:[#allocation5 + $0x8] sm:$0xff] %vm231_vm2, %v548_v49  ;;  %v639_v50 = vpop.f32.mrb[5].mxu0  ;;  %v644_v51 = vpop.f32.mrb[5].mxu1 }
 0x2c4   :  { %707 = shalt.err (!%p704_p12)
}
 0x2c5   :  { %s708_s13 = scalar_lea.hbm %s856_s6, 256 }
 0x2c6   :  { %p709_p13 = scmp.ne.s32.totalorder %s856_s6, %s708_s13  ;;  %p712_p0 = scmp.lt.u32.totalorder %s708_s13, %s856_s6 }
 0x2c8   :  { %p714_p1 = pnand %p712_p0, %p709_p13 }
 0x2ca   :  { %717 = shalt.err (!%p714_p1)
}
 0x2cb   :  { %565 = dma.vmem_to_hbm [thread:$0]  %s560_s5, 256, %s856_s6, [#allocation4], %s723_s7, %s723_s7, %s724_s8  }
 0x2cc   :  { %720 = dma.done.wait [#allocation4], 256  }
 0x2cd   :  { %721 = vsyncadd [#allocation4], 4294967040 }
 0x2ce   :  { %569 = vsyncpa [#allocation3], 1 }
 0x2cf   :  { %570 = vsyncpa [#allocation4], 1 }

</bundles_post_ra>
